<compile_context>
chip_gen: v7x
topology: tpu7x:2x2x1
jax: 0.10.0
libtpu: 0.0.40
codegen_flags: <defaults>
</compile_context>

<pallas_src>
import jax
import jax.numpy as jnp
from jax.experimental import pallas as pl
from jax.experimental.pallas import tpu as pltpu

EPS = 0.01  # matches nn.InstanceNorm2d(in_channel, eps=0.01)


# ----------------------------------------------------------------------------
# Generation-aware VMEM budgeting
# ----------------------------------------------------------------------------
def _vmem_plan():
    """Return (block_target_bytes, vmem_limit_bytes) for this TPU generation."""
    try:
        vmem_phys = int(pltpu.get_tpu_info().vmem_capacity_bytes)
    except Exception:
        vmem_phys = 64 * 1024 * 1024          # assume smallest (v7x) if query fails
    if vmem_phys >= 96 * 1024 * 1024:         # v5e / v6e: 128 MiB physical
        vmem_limit = 48 * 1024 * 1024
    else:                                      # v7x: 64 MiB physical
        vmem_limit = 30 * 1024 * 1024
    # 4 live big buffers (input + output, each double-buffered) + headroom for
    # f32 intermediates and the tiny gamma/beta blocks.
    block_target = vmem_limit // 5
    return block_target, vmem_limit


def _sublane_granularity(dtype) -> int:
    """Rows per fully-packed vreg: 8 for f32, 16 for bf16, 32 for int8/fp8."""
    itemsize = jnp.dtype(dtype).itemsize
    return max(8, 32 // max(1, itemsize))


def _pick_row_tile(rows: int, hw: int, dtype, target_bytes: int) -> int:
    """Largest multiple-of-granularity row tile whose f32 block fits the budget."""
    gran = _sublane_granularity(dtype)
    if rows <= gran:
        return rows                            # full-extent block: always legal
    bytes_per_row = hw * 4                     # size with f32 compute footprint
    max_rows = max(gran, target_bytes // max(1, bytes_per_row))
    tile = min(rows, (max_rows // gran) * gran)
    return max(tile, gran)


# ----------------------------------------------------------------------------
# Kernel: per-(batch, channel)-row instance-norm + affine modulation
#   x block:  (row_tile, HW)
#   gb block: (row_tile, 2)  -> column 0 = gamma, column 1 = beta (f32)
# ----------------------------------------------------------------------------
def _make_adain_kernel(apply_norm: bool, inv_hw: float):
    def adain_kernel(x_ref, gb_ref, o_ref):
        x = x_ref[...].astype(jnp.float32)     # (row_tile, HW)
        gamma = gb_ref[:, 0:1]                  # (row_tile, 1) f32
        beta = gb_ref[:, 1:2]                   # (row_tile, 1) f32

        if apply_norm:
            # Two-pass statistics for parity with the PyTorch reference.
            mean = jnp.sum(x, axis=-1, keepdims=True) * inv_hw
            xc = x - mean
            var = jnp.sum(xc * xc, axis=-1, keepdims=True) * inv_hw
            scale = gamma * jax.lax.rsqrt(var + EPS)
            o_ref[...] = (xc * scale + beta).astype(o_ref.dtype)
        else:
            o_ref[...] = (x * gamma + beta).astype(o_ref.dtype)

    return adain_kernel


def adaptive_instance_norm(x, style, weight, bias):
    """x: (B, C, H, W) NCHW, style: (B, style_dim), weight: (2C, S), bias: (2C,)."""
    B, C, H, W = x.shape
    HW = H * W
    rows = B * C
    apply_norm = W > 1                          # mirrors `if input.shape[3] > 1`

    # EqualLinear forward in plain JAX (tiny matmul; XLA handles it).
    st = (style.astype(jnp.float32) @ weight.T.astype(jnp.float32)
          + bias.astype(jnp.float32))                          # (B, 2C)
    gamma = st[:, :C].reshape(rows)
    beta = st[:, C:].reshape(rows)
    gb = jnp.stack([gamma, beta], axis=-1)                     # (rows, 2) f32

    x2 = x.reshape(rows, HW)

    block_target, vmem_limit = _vmem_plan()
    row_tile = _pick_row_tile(rows, HW, x.dtype, block_target)
    grid = (pl.cdiv(rows, row_tile),)           # ragged last block is safe

    out = pl.pallas_call(
        _make_adain_kernel(apply_norm, 1.0 / HW),
        out_shape=jax.ShapeDtypeStruct((rows, HW), x.dtype),
        grid=grid,
        in_specs=[
            pl.BlockSpec((row_tile, HW), lambda r: (r, 0)),
            pl.BlockSpec((row_tile, 2), lambda r: (r, 0)),
        ],
        out_specs=pl.BlockSpec((row_tile, HW), lambda r: (r, 0)),
        compiler_params=pltpu.CompilerParams(
            dimension_semantics=("parallel",),
            vmem_limit_bytes=vmem_limit,
        ),
    )(x2, gb)
    return out.reshape(B, C, H, W)


# ----------------------------------------------------------------------------
# Pure-JAX reference for correctness check
# ----------------------------------------------------------------------------
def _reference(x, style, weight, bias):
    B, C, H, W = x.shape
    st = style @ weight.T + bias                # (B, 2C)
    gamma = st[:, :C].reshape(B, C, 1, 1)
    beta = st[:, C:].reshape(B, C, 1, 1)
    out = x
    if W > 1:
        mean = x.mean(axis=(2, 3), keepdims=True)
        var = ((x - mean) ** 2).mean(axis=(2, 3), keepdims=True)
        out = (x - mean) / jnp.sqrt(var + EPS)
    return gamma * out + beta


if __name__ == "__main__":
    key = jax.random.PRNGKey(0)
    B, C, H, W = 2, 4, 16, 16
    style_dim = 8

    k1, k2, k3 = jax.random.split(key, 3)
    x = jax.random.normal(k1, (B, C, H, W), dtype=jnp.float32)
    style = jax.random.normal(k2, (B, style_dim), dtype=jnp.float32)

    # EqualLinear params: nn.Linear(style_dim, 2C) weight init (uniform),
    # bias per module __init__: first C entries = 1, rest = 0.
    bound = 1.0 / (style_dim ** 0.5)
    weight = jax.random.uniform(
        k3, (2 * C, style_dim), minval=-bound, maxval=bound, dtype=jnp.float32
    )
    bias = jnp.concatenate(
        [jnp.ones((C,), jnp.float32), jnp.zeros((C,), jnp.float32)]
    )

    out = adaptive_instance_norm(x, style, weight, bias)
    jax.block_until_ready(out)

    ref = _reference(x, style, weight, bias)
    assert out.shape == (B, C, H, W)
    assert jnp.allclose(out, ref, atol=1e-4, rtol=1e-4), float(
        jnp.max(jnp.abs(out - ref))
    )
    print("KERNEL_OK")
</pallas_src>

<mosaic_0001>
module attributes {stable_mosaic.version = 11 : i64} {
  func.func @adain_kernel(%arg0: i32, %arg1: memref<8x256xf32, #tpu.memory_space<vmem>>, %arg2: memref<8x2xf32, #tpu.memory_space<vmem>>, %arg3: memref<8x256xf32, #tpu.memory_space<vmem>>) attributes {dimension_semantics = [#tpu.dimension_semantics<parallel>], iteration_bounds = array<i64: 1>, scalar_prefetch = 0 : i64, scratch_operands = 0 : i64, tpu.core_type = #tpu.core_type<tc>, window_params = [{transform_indices = @transform_0, window_bounds = array<i64: 8, 256>}, {transform_indices = @transform_1, window_bounds = array<i64: 8, 2>}, {transform_indices = @transform_2, window_bounds = array<i64: 8, 256>}]} {
    %c0 = arith.constant 0 : index
    %c0_0 = arith.constant 0 : index
    %0 = vector.load %arg1[%c0, %c0_0] : memref<8x256xf32, #tpu.memory_space<vmem>>, vector<8x256xf32>
    %c0_1 = arith.constant 0 : index
    %c0_2 = arith.constant 0 : index
    %1 = vector.load %arg2[%c0_1, %c0_2] : memref<8x2xf32, #tpu.memory_space<vmem>>, vector<8x1xf32>
    %c0_3 = arith.constant 0 : index
    %c1 = arith.constant 1 : index
    %2 = vector.load %arg2[%c0_3, %c1] : memref<8x2xf32, #tpu.memory_space<vmem>>, vector<8x1xf32>
    %cst = arith.constant dense<0.000000e+00> : vector<8xf32>
    %3 = vector.multi_reduction <add>, %0, %cst [1] : vector<8x256xf32> to vector<8xf32>
    %4 = vector.shape_cast %3 : vector<8xf32> to vector<8x1xf32>
    %cst_4 = arith.constant 3.906250e-03 : f32
    %5 = vector.broadcast %cst_4 : f32 to vector<8x1xf32>
    %6 = arith.mulf %4, %5 : vector<8x1xf32>
    %7 = vector.broadcast %6 : vector<8x1xf32> to vector<8x256xf32>
    %8 = arith.subf %0, %7 : vector<8x256xf32>
    %9 = arith.mulf %8, %8 : vector<8x256xf32>
    %cst_5 = arith.constant dense<0.000000e+00> : vector<8xf32>
    %10 = vector.multi_reduction <add>, %9, %cst_5 [1] : vector<8x256xf32> to vector<8xf32>
    %11 = vector.shape_cast %10 : vector<8xf32> to vector<8x1xf32>
    %cst_6 = arith.constant 3.906250e-03 : f32
    %12 = vector.broadcast %cst_6 : f32 to vector<8x1xf32>
    %13 = arith.mulf %11, %12 : vector<8x1xf32>
    %cst_7 = arith.constant 0.00999999977 : f32
    %14 = vector.broadcast %cst_7 : f32 to vector<8x1xf32>
    %15 = arith.addf %13, %14 : vector<8x1xf32>
    %16 = math.rsqrt %15 : vector<8x1xf32>
    %17 = arith.mulf %1, %16 : vector<8x1xf32>
    %18 = vector.broadcast %17 : vector<8x1xf32> to vector<8x256xf32>
    %19 = arith.mulf %8, %18 : vector<8x256xf32>
    %20 = vector.broadcast %2 : vector<8x1xf32> to vector<8x256xf32>
    %21 = arith.addf %19, %20 : vector<8x256xf32>
    %c0_8 = arith.constant 0 : index
    %c0_9 = arith.constant 0 : index
    %22 = vector.load %arg3[%c0_8, %c0_9] : memref<8x256xf32, #tpu.memory_space<vmem>>, vector<8x256xf32>
    tpu.vector_store %arg3[%c0_8, %c0_9], %21 {strides = array<i32>} : memref<8x256xf32, #tpu.memory_space<vmem>>, vector<8x256xf32>,
    return
  }
  func.func @transform_0(%arg0: i32) -> (i32, i32) {
    %c0_i32 = arith.constant 0 : i32
    %c0_i32_0 = arith.constant 0 : i32
    return %arg0, %c0_i32 : i32, i32
  }
  func.func @transform_1(%arg0: i32) -> (i32, i32) {
    %c0_i32 = arith.constant 0 : i32
    %c0_i32_0 = arith.constant 0 : i32
    return %arg0, %c0_i32 : i32, i32
  }
  func.func @transform_2(%arg0: i32) -> (i32, i32) {
    %c0_i32 = arith.constant 0 : i32
    %c0_i32_0 = arith.constant 0 : i32
    return %arg0, %c0_i32 : i32, i32
  }
}

</mosaic_0001>

<bundles_post_ra>
// kernel: tpu_custom_call.1
= control target key start
LH: loop header
LB: loop body
LE: loop exit
PB: predicated region body
PF: predicated region fallthrough
CT: control target
= control target key end

     0   :  { %7 = vsyncpa [#allocation3], 0  ;;  %s176_s0 = inlined_call_operand.hbm [shape: f32[8,256], index: 0, kind: input, shape index: {}]   ;;  %s177_s1 = inlined_call_operand.vmem [shape: f32[8,2], index: 1, kind: input, shape index: {}]   ;;  %s178_s2 = inlined_call_operand.hbm [shape: f32[8,256], index: 2, kind: output, shape index: {}]  }
   0x1   :  { %8 = vsyncpa [#allocation4], 0  ;;  %s130_s9 = smov [#allocation2]   ;;  %s82_s13 = scalar_lea.hbm %s176_s0, 256 }
   0x2   :  { %s15_s10 = sshll.u32 %s130_s9, 4  ;;  %p83_p0 = scmp.ne.s32.totalorder %s176_s0, %s82_s13  ;;  %s16_s10 = int_to_ptr.vmem [resolvable:$true] %s15_s10 }
   0x3   :  { %p86_p1 = scmp.lt.u32.totalorder %s82_s13, %s176_s0 }
   0x5   :  { %p88_p2 = pnand %p86_p1, %p83_p0 }
   0x7   :  { %91 = shalt.err (!%p88_p2)
}
   0x8   :  { %s92_s18 = scalar_lea.vmem %s16_s10, 256  ;;  %p97_p4 = scmp.lt.s32.totalorder %s16_s10, %s16_s10 }
   0x9   :  { %p93_p3 = scmp.ne.s32.totalorder %s16_s10, %s92_s18  ;;  %p98_p5 = scmp.lt.s32.totalorder %s92_s18, %s92_s18 }
   0xb   :  { %p99_p6 = por %p98_p5, %p97_p4 }
   0xd   :  { %p100_p7 = pnand %p99_p6, %p93_p3 }
   0xf   :  { %103 = shalt.err (!%p100_p7)
}
  0x10   :  { %18 = dma.hbm_to_vmem [thread:$0]  %s176_s0, 256, %s16_s10, [#allocation3]  }
  0x11   :  { %126 = dma.done.wait [#allocation3], 256  }
  0x12   :  { %127 = vsyncadd [#allocation3], 4294967040  ;;  %v24_v0 = vld [vmem:[#allocation2] sm:$0xff]  ;;  %v25_v1 = vld [vmem:[#allocation2 + $0x8] sm:$0xff]  ;;  %v131_v10 = vmov 0   ;;  %v132_v11 = vmov 1  }
  0x13   :  { %v27_v2 = vadd.f32 %v25_v1, %v24_v0  ;;  %77 = vset.pattern.permute.xlu1 %v131_v10  ;;  %79 = vset.pattern.permute.xlu0 %v132_v11  ;;  %v26_v15 = vld [vmem:[%s177_s1] sm:$0xff]  ;;  %s133_s22 = smov [#allocation5]  }
  0x14   :  { %s64_s23 = sshll.u32 %s133_s22, 4  ;;  %s65_s23 = int_to_ptr.vmem [resolvable:$true] %s64_s23 }
  0x15   :  { %28 = vadd.xlane.f32.xlu0 %v27_v2  ;;  %s104_s24 = scalar_lea.vmem %s65_s23, 256  ;;  %p109_p9 = scmp.lt.s32.totalorder %s65_s23, %s65_s23 }
  0x16   :  { %p105_p8 = scmp.ne.s32.totalorder %s65_s23, %s104_s24  ;;  %p110_p10 = scmp.lt.s32.totalorder %s104_s24, %s104_s24 }
  0x18   :  { %p111_p11 = por %p110_p10, %p109_p9 }
  0x1a   :  { %p112_p12 = pnand %p111_p11, %p105_p8 }
  0xa2   :  { %v29_v3 = vpop.xlane.xlu0 %28 }
  0xa3   :  { %v30_v4 = vmul.f32 0.00390625, %v29_v3 }
  0xa5   :  { %v31_v5 = vsub.f32 %v24_v0, %v30_v4  ;;  %v32_v6 = vsub.f32 %v25_v1, %v30_v4 }
  0xa7   :  { %v33_v7 = vmul.f32 %v31_v5, %v31_v5  ;;  %v34_v8 = vmul.f32 %v32_v6, %v32_v6 }
  0xa9   :  { %v35_v9 = vadd.f32 %v34_v8, %v33_v7 }
  0xab   :  { %36 = vadd.xlane.f32.xlu0 %v35_v9 }
 0x138   :  { %v37_v12 = vpop.xlane.xlu0 %36 }
 0x139   :  { %v38_v13 = vmul.f32 0.00390625, %v37_v12 }
 0x13b   :  { %v39_v14 = vadd.f32 0.01, %v38_v13 }
 0x13d   :  { %80 = vrsqrt.f32 %v39_v14 }
 0x147   :  { %v81_v16 = vpop.eup %80 }
 0x148   :  { %v41_v17 = vmul.f32 %v81_v16, %v26_v15 }
 0x14a   :  { %44 = vperm.xlu1 %77, %v41_v17  }
 0x14e   :  { %78 = vset.pattern.permute.xlu1 %v132_v11 }
 0x14f   :  { %51 = vperm.xlu1 %78, %v26_v15  }
 0x1c9   :  { %v45_v18 = vpop.permute.xlu1 %44 }
 0x1ca   :  { %v47_v19 = vmul.f32 %v45_v18, %v31_v5  ;;  %v48_v20 = vmul.f32 %v45_v18, %v32_v6 }
 0x1ce   :  { %v52_v21 = vpop.permute.xlu1 %51 }
 0x1cf   :  { %v54_v22 = vadd.f32 %v52_v21, %v47_v19  ;;  %v55_v23 = vadd.f32 %v52_v21, %v48_v20 }
 0x1d1   :  { %56 = vst [vmem:[#allocation5] sm:$0xff] %v54_v22  ;;  %57 = vst [vmem:[#allocation5 + $0x8] sm:$0xff] %v55_v23 }
 0x1d2   :  { %115 = shalt.err (!%p112_p12)
}
 0x1d3   :  { %s116_s26 = scalar_lea.hbm %s178_s2, 256 }
 0x1d4   :  { %p117_p13 = scmp.ne.s32.totalorder %s178_s2, %s116_s26  ;;  %p120_p0 = scmp.lt.u32.totalorder %s116_s26, %s178_s2 }
 0x1d6   :  { %p122_p1 = pnand %p120_p0, %p117_p13 }
 0x1d8   :  { %125 = shalt.err (!%p122_p1)
}
 0x1d9   :  { %67 = dma.vmem_to_hbm [thread:$0]  %s65_s23, 256, %s178_s2, [#allocation4]  }
 0x1da   :  { %128 = dma.done.wait [#allocation4], 256  }
 0x1db   :  { %129 = vsyncadd [#allocation4], 4294967040 }
 0x1dc   :  { %71 = vsyncpa [#allocation3], 1 }
 0x1dd   :  { %72 = vsyncpa [#allocation4], 1 }

</bundles_post_ra>
